<compile_context>
chip_gen: v7x
topology: tpu7x:2x2x1
jax: 0.10.0
libtpu: 0.0.40
codegen_flags: <defaults>
</compile_context>

<pallas_src>
import functools
import numpy as np
import jax
import jax.numpy as jnp
from jax.experimental import pallas as pl
from jax.experimental.pallas import tpu as pltpu


# ----------------------------------------------------------------------------
# 1. Main MSE: lane-dense tiled reduction, no input padding, megacore split
# ----------------------------------------------------------------------------
def _mse_sum_kernel(a_ref, b_ref, out_ref, acc_ref, *, tr, rows, ragged):
    c = pl.program_id(0)          # core-split axis ("parallel")
    i = pl.program_id(1)          # row-block axis ("arbitrary", reduction)

    @pl.when(i == 0)
    def _init():
        acc_ref[...] = jnp.zeros_like(acc_ref)

    d = a_ref[...].astype(jnp.float32) - b_ref[...].astype(jnp.float32)
    sq = d * d

    if ragged:
        # logical (unclamped) row-block index; mask rows past the true row count
        blk = c * pl.num_programs(1) + i
        row0 = blk * tr
        row_ids = row0 + jax.lax.broadcasted_iota(jnp.int32, (tr, 128), 0)
        sq = jnp.where(row_ids < rows, sq, 0.0)

    if tr % 8 == 0:
        # VALU-only per-tile reduce into a resident (8,128) accumulator
        acc_ref[...] += sq.reshape(tr // 8, 8, 128).sum(axis=0)
    else:
        acc_ref[0:1, :] += jnp.sum(sq, axis=0, keepdims=True)

    @pl.when(i == pl.num_programs(1) - 1)
    def _finalize():
        out_ref[0] = acc_ref[...]


def mse_loss(a, b, *, tile_rows=8192):
    """F.mse_loss(a, b, reduction='mean') via a tiled sum-of-squares kernel."""
    assert a.shape == b.shape
    n = int(np.prod(a.shape))
    lanes = 128

    a_flat = a.reshape(-1)
    b_flat = b.reshape(-1)
    rem = n % lanes
    if rem:
        # TODO(synk): rare (n % 128 != 0) tail still uses jnp.pad (copies the inputs);
        # could be handled by a tiny separate tail pass instead.
        a_flat = jnp.pad(a_flat, (0, lanes - rem))
        b_flat = jnp.pad(b_flat, (0, lanes - rem))
    rows = pl.cdiv(n, lanes)
    a2 = a_flat.reshape(rows, lanes)
    b2 = b_flat.reshape(rows, lanes)

    # block rows: full extent if small (exempt from sublane-multiple rule), else 8192 (mult of 32)
    tr = rows if rows <= tile_rows else tile_rows
    nb = pl.cdiv(rows, tr)                      # number of row blocks
    n_split = 2 if nb >= 2 else 1               # megacore split (v7x); harmless on 1-TC chips
    nb_half = pl.cdiv(nb, n_split)
    ragged = (rows % tr != 0) or (nb_half * n_split != nb)

    def idx_map(c, i):
        # clamp the overhang block (when nb is odd) to a valid block; kernel masks it fully
        return (jnp.minimum(c * nb_half + i, nb - 1), 0)

    kernel = functools.partial(_mse_sum_kernel, tr=tr, rows=rows, ragged=ragged)
    out = pl.pallas_call(
        kernel,
        out_shape=jax.ShapeDtypeStruct((n_split, 8, 128), jnp.float32),
        grid=(n_split, nb_half),
        in_specs=[pl.BlockSpec((tr, lanes), idx_map),
                  pl.BlockSpec((tr, lanes), idx_map)],
        out_specs=pl.BlockSpec((1, 8, 128), lambda c, i: (c, 0, 0)),
        scratch_shapes=[pltpu.VMEM((8, 128), jnp.float32)],
        compiler_params=pltpu.CompilerParams(
            dimension_semantics=("parallel", "arbitrary"),
            vmem_limit_bytes=32 * 1024 * 1024),
    )(a2, b2)
    # divide by the TRUE element count (not per-tile means)
    return out.sum() / jnp.float32(n)


# ----------------------------------------------------------------------------
# 2. Cached constant matrices (host-side, lru_cached per shape)
# ----------------------------------------------------------------------------
@functools.lru_cache(maxsize=None)
def _band_matrix(n, margin):
    """Banded all-ones matrix (bf16, exact for 0/1): band[i,j] = 1 iff |i-j| <= margin.
    conv2d(mask, ones(2m+1, 2m+1), pad=m) == Bh @ mask @ Bw."""
    idx = np.arange(n)
    band = (np.abs(idx[:, None] - idx[None, :]) <= margin).astype(np.float32)
    return jnp.asarray(band, dtype=jnp.bfloat16)


@functools.lru_cache(maxsize=None)
def _bilinear_matrix_np(out_size, in_size):
    """Interpolation matrix A [out,in] for F.interpolate(mode='bilinear', align_corners=True)."""
    A = np.zeros((out_size, in_size), np.float32)
    scale = 0.0 if (out_size == 1 or in_size == 1) else (in_size - 1) / (out_size - 1)
    for i in range(out_size):
        src = i * scale
        lo = min(int(np.floor(src)), in_size - 1)
        hi = min(lo + 1, in_size - 1)
        w = src - lo
        A[i, lo] += 1.0 - w
        A[i, hi] += w
    return A


@functools.lru_cache(maxsize=None)
def _bilinear_matrix(out_size, in_size):
    return jnp.asarray(_bilinear_matrix_np(out_size, in_size))


@functools.lru_cache(maxsize=None)
def _bilinear_matrix_t(out_size, in_size):
    return jnp.asarray(_bilinear_matrix_np(out_size, in_size).T)   # [in, out]


# ----------------------------------------------------------------------------
# 3. Fused perceptual kernel, gridded over batch:
#      background-mask dilation (bf16 banded MXU matmuls) +
#      shared bilinear resize of [mask | bg] per level + masked feature means,
#      one scalar partial per sample (summed in the wrapper).
# ----------------------------------------------------------------------------
def _make_perceptual_kernel(n_feat, batch_size):
    def kernel(*refs):
        mask_ref, bh_ref, bw_ref = refs[:3]
        feat_refs = refs[3:3 + n_feat]
        ah_refs = refs[3 + n_feat:3 + 2 * n_feat]
        awt_refs = refs[3 + 2 * n_feat:3 + 3 * n_feat]
        out_ref = refs[3 + 3 * n_feat]

        mask = mask_ref[0].astype(jnp.float32)                 # [Hm, Wm]
        Hm, Wm = mask.shape

        # --- (2m+1)x(2m+1) all-ones dilation as two banded matmuls (bf16 ops, f32 acc) ---
        t = jnp.dot(bh_ref[...], mask.astype(jnp.bfloat16),
                    preferred_element_type=jnp.float32)        # [Hm, Wm]
        box = jnp.dot(t.astype(jnp.bfloat16), bw_ref[...],
                      preferred_element_type=jnp.float32)      # [Hm, Wm]
        bg = jnp.clip((box > 0.0).astype(jnp.float32) - mask, 0.0, 1.0)

        # stack object + background masks so each level runs ONE resize
        m2 = jnp.concatenate([mask, bg], axis=1)               # [Hm, 2*Wm]

        total = jnp.float32(0.0)
        for feat_ref, ah_ref, awt_ref in zip(feat_refs, ah_refs, awt_refs):
            Ah = ah_ref[...]                                   # [Hf, Hm] f32
            AwT = awt_ref[...]                                 # [Wm, Wf] f32
            Hf = Ah.shape[0]
            Wf = AwT.shape[1]

            # bilinear (align_corners=True) resize of both masks: 2 lane-dense 2-D dots
            s = jnp.dot(Ah, m2, preferred_element_type=jnp.float32)        # [Hf, 2*Wm]
            s2 = jnp.concatenate([s[:, :Wm], s[:, Wm:]], axis=0)           # [2*Hf, Wm]
            r2 = jnp.dot(s2, AwT, preferred_element_type=jnp.float32)      # [2*Hf, Wf]
            obj_r = r2[:Hf]                                    # [Hf, Wf]
            bg_r = r2[Hf:]                                     # [Hf, Wf]

            obj_den = jnp.sum(obj_r) + 1e-8                    # per-sample scalars (f32)
            bg_den = jnp.sum(bg_r) + 1e-8

            # masked feature sums: one matmul against the stacked (n,2) RHS;
            # normalization + obj/bg subtraction stay in f32 (no lossy cast of a difference)
            nsp = Hf * Wf
            R = jnp.concatenate([obj_r.reshape(nsp, 1), bg_r.reshape(nsp, 1)], axis=1)
            feat = feat_ref[0]                                 # [C, n] native dtype (bf16 stays bf16)
            C = feat.shape[0]
            sums = jnp.dot(feat, R.astype(feat.dtype),
                           preferred_element_type=jnp.float32)             # [C, 2]
            d = sums[:, 0:1] / obj_den - sums[:, 1:2] / bg_den             # [C, 1] f32
            total = total + jnp.sum(d * d) * (1.0 / float(batch_size * C))

        out_ref[...] = total.reshape(1, 1, 1)

    return kernel


def pvt_perceptual_loss(pvt_features, masks, margin=10):
    """PVTPerceptualLoss(features, mask, create_background_mask(mask)), fused, gridded over B."""
    B, _, Hm, Wm = masks.shape
    mask = masks[:, 0]                                        # [B, Hm, Wm]
    bh = _band_matrix(Hm, margin)                             # bf16 [Hm, Hm]
    bw = _band_matrix(Wm, margin)                             # bf16 [Wm, Wm]

    # wrapper-side layout plumbing: flatten spatial dims so the kernel never reshapes features
    feats = [f.reshape(B, int(f.shape[1]), int(f.shape[2]) * int(f.shape[3]))
             for f in pvt_features]
    ahs = [_bilinear_matrix(int(f.shape[2]), Hm) for f in pvt_features]    # [Hf, Hm]
    awts = [_bilinear_matrix_t(int(f.shape[3]), Wm) for f in pvt_features] # [Wm, Wf]

    in_specs = [
        pl.BlockSpec((1, Hm, Wm), lambda b: (b, 0, 0)),
        pl.BlockSpec((Hm, Hm), lambda b: (0, 0)),
        pl.BlockSpec((Wm, Wm), lambda b: (0, 0)),
    ]
    for f in feats:
        in_specs.append(pl.BlockSpec((1, int(f.shape[1]), int(f.shape[2])),
                                     lambda b: (b, 0, 0)))
    for a in ahs:
        in_specs.append(pl.BlockSpec(tuple(int(s) for s in a.shape), lambda b: (0, 0)))
    for a in awts:
        in_specs.append(pl.BlockSpec(tuple(int(s) for s in a.shape), lambda b: (0, 0)))

    out = pl.pallas_call(
        _make_perceptual_kernel(len(feats), B),
        out_shape=jax.ShapeDtypeStruct((B, 1, 1), jnp.float32),
        grid=(B,),
        in_specs=in_specs,
        out_specs=pl.BlockSpec((1, 1, 1), lambda b: (b, 0, 0)),
        compiler_params=pltpu.CompilerParams(dimension_semantics=("parallel",)),
    )(mask, bh, bw, *feats, *ahs, *awts)
    return out.sum()


# ----------------------------------------------------------------------------
# StreamlinedLoss forward (glue). No learnable parameters.
# ----------------------------------------------------------------------------
class StreamlinedLoss:
    def __init__(self, alpha_perceptual=0.1, alpha_domain=0.1, alpha_semantic=0.1):
        self.alpha_perceptual = alpha_perceptual
        self.alpha_domain = alpha_domain      # unused in reference forward
        self.alpha_semantic = alpha_semantic  # unused in reference forward

    def __call__(self, model_outputs, targets, images, masks, domain_labels=None):
        target_pred = model_outputs['target_pred']
        pvt_features = model_outputs.get('pvt_features', None)

        main_loss = mse_loss(target_pred, targets)
        total_loss = main_loss
        # keep jnp scalars -> no device sync inside the forward (convert lazily outside)
        loss_dict = {'main_loss': main_loss}

        if self.alpha_perceptual > 0 and pvt_features is not None:
            # background-mask creation is fused into the perceptual kernel
            perceptual_loss = pvt_perceptual_loss(pvt_features, masks)
            total_loss = total_loss + self.alpha_perceptual * perceptual_loss
            loss_dict['perceptual_loss'] = perceptual_loss
        else:
            loss_dict['perceptual_loss'] = 0

        return total_loss, loss_dict


# ----------------------------------------------------------------------------
# Pure-JAX reference (same math) for the sanity check
# ----------------------------------------------------------------------------
def _reference_loss(model_outputs, targets, masks, alpha=0.1, margin=10):
    target_pred = model_outputs['target_pred']
    main = jnp.mean((target_pred - targets) ** 2)
    kern = jnp.ones((1, 1, 2 * margin + 1, 2 * margin + 1), jnp.float32)
    dil = jax.lax.conv_general_dilated(
        masks, kern, (1, 1), ((margin, margin), (margin, margin)),
        dimension_numbers=('NCHW', 'OIHW', 'NCHW'))
    bg = jnp.clip((dil > 0).astype(jnp.float32) - masks, 0.0, 1.0)
    B, _, Hm, Wm = masks.shape
    ploss = jnp.float32(0.0)
    for feat in model_outputs['pvt_features']:
        _, C, Hf, Wf = feat.shape
        Ah = _bilinear_matrix(Hf, Hm)
        Aw = _bilinear_matrix(Wf, Wm)
        obj_r = jnp.einsum('ih,bhw,jw->bij', Ah, masks[:, 0], Aw)
        bg_r = jnp.einsum('ih,bhw,jw->bij', Ah, bg[:, 0], Aw)
        obj_mean = jnp.sum(feat * obj_r[:, None], axis=(2, 3)) / (jnp.sum(obj_r, axis=(1, 2))[:, None] + 1e-8)
        bg_mean = jnp.sum(feat * bg_r[:, None], axis=(2, 3)) / (jnp.sum(bg_r, axis=(1, 2))[:, None] + 1e-8)
        ploss = ploss + jnp.mean((obj_mean - bg_mean) ** 2)
    return main + alpha * ploss


if __name__ == "__main__":
    key = jax.random.PRNGKey(0)
    k1, k2, k3, k4, k5, k6, k7 = jax.random.split(key, 7)

    B, H, W = 2, 64, 64

    # binary object mask: centered rectangle (deterministic)
    masks = jnp.zeros((B, 1, H, W), jnp.float32)
    masks = masks.at[:, :, 20:40, 24:44].set(1.0)

    targets = jax.random.normal(k1, (B, 1, H, W), jnp.float32)
    target_pred = jax.random.normal(k2, (B, 1, H, W), jnp.float32)
    pred = jax.random.normal(k3, (B, 1, H, W), jnp.float32)
    fixation = jax.random.normal(k4, (B, 1, H, W), jnp.float32)
    images = jax.random.normal(k5, (B, 3, H, W), jnp.float32)

    # PVT backbone features (strides 4/8/16/32 of the 64x64 input)
    pvt_features = [
        jax.random.normal(k6, (B, 8, 16, 16), jnp.float32),
        jax.random.normal(k7, (B, 16, 8, 8), jnp.float32),
        jax.random.normal(k1, (B, 32, 4, 4), jnp.float32),
        jax.random.normal(k2, (B, 64, 2, 2), jnp.float32),
    ]

    model_outputs = {
        'pred': pred,
        'target_pred': target_pred,
        'fixation': fixation,
        'pvt_features': pvt_features,
    }

    loss_fn = StreamlinedLoss(alpha_perceptual=0.1)
    total_loss, loss_dict = loss_fn(model_outputs, targets, images, masks)
    total_loss = jax.block_until_ready(total_loss)

    # sanity check vs pure-JAX reference (slightly loose tol: MXU matmul precision)
    ref = jax.block_until_ready(_reference_loss(model_outputs, targets, masks))
    assert np.isfinite(float(total_loss))
    np.testing.assert_allclose(float(total_loss), float(ref), rtol=1e-3, atol=1e-5)

    print("KERNEL_OK")
</pallas_src>

<mosaic_0001>
module attributes {stable_mosaic.version = 11 : i64} {
  func.func @_mse_sum_kernel(%arg0: i32, %arg1: i32, %arg2: memref<64x128xf32, #tpu.memory_space<vmem>>, %arg3: memref<64x128xf32, #tpu.memory_space<vmem>>, %arg4: memref<1x8x128xf32, #tpu.memory_space<vmem>>, %arg5: memref<8x128xf32, #tpu.memory_space<vmem>>) attributes {dimension_semantics = [#tpu.dimension_semantics<parallel>, #tpu.dimension_semantics<arbitrary>], iteration_bounds = array<i64: 1, 1>, scalar_prefetch = 0 : i64, scratch_operands = 1 : i64, tpu.core_type = #tpu.core_type<tc>, window_params = [{transform_indices = @transform_0, window_bounds = array<i64: 64, 128>}, {transform_indices = @transform_1, window_bounds = array<i64: 64, 128>}, {transform_indices = @transform_2, window_bounds = array<i64: 1, 8, 128>}]} {
    %c0_i32 = arith.constant 0 : i32
    %0 = arith.cmpi eq, %arg1, %c0_i32 : i32
    %1 = arith.extui %0 : i1 to i32
    %c0_i32_0 = arith.constant 0 : i32
    %2 = arith.cmpi ne, %1, %c0_i32_0 : i32
    scf.if %2 {
      %cst_10 = arith.constant 0.000000e+00 : f32
      %15 = vector.broadcast %cst_10 : f32 to vector<8x128xf32>
      %c0_11 = arith.constant 0 : index
      %c0_12 = arith.constant 0 : index
      %16 = vector.load %arg5[%c0_11, %c0_12] : memref<8x128xf32, #tpu.memory_space<vmem>>, vector<8x128xf32>
      tpu.vector_store %arg5[%c0_11, %c0_12], %15 {strides = array<i32>} : memref<8x128xf32, #tpu.memory_space<vmem>>, vector<8x128xf32>,
    } else {
    }
    %c0 = arith.constant 0 : index
    %c0_1 = arith.constant 0 : index
    %3 = vector.load %arg2[%c0, %c0_1] : memref<64x128xf32, #tpu.memory_space<vmem>>, vector<64x128xf32>
    %c0_2 = arith.constant 0 : index
    %c0_3 = arith.constant 0 : index
    %4 = vector.load %arg3[%c0_2, %c0_3] : memref<64x128xf32, #tpu.memory_space<vmem>>, vector<64x128xf32>
    %5 = arith.subf %3, %4 : vector<64x128xf32>
    %6 = arith.mulf %5, %5 : vector<64x128xf32>
    %c0_4 = arith.constant 0 : index
    %c0_5 = arith.constant 0 : index
    %7 = vector.load %arg5[%c0_4, %c0_5] : memref<8x128xf32, #tpu.memory_space<vmem>>, vector<8x128xf32>
    %8 = vector.shape_cast %6 : vector<64x128xf32> to vector<8x8x128xf32>
    %cst = arith.constant dense<0.000000e+00> : vector<8x128xf32>
    %9 = vector.multi_reduction <add>, %8, %cst [0] : vector<8x8x128xf32> to vector<8x128xf32>
    %10 = arith.addf %7, %9 : vector<8x128xf32>
    %c0_6 = arith.constant 0 : index
    %c0_7 = arith.constant 0 : index
    %11 = vector.load %arg5[%c0_6, %c0_7] : memref<8x128xf32, #tpu.memory_space<vmem>>, vector<8x128xf32>
    tpu.vector_store %arg5[%c0_6, %c0_7], %10 {strides = array<i32>} : memref<8x128xf32, #tpu.memory_space<vmem>>, vector<8x128xf32>,
    %c0_i32_8 = arith.constant 0 : i32
    %12 = arith.cmpi eq, %arg1, %c0_i32_8 : i32
    %13 = arith.extui %12 : i1 to i32
    %c0_i32_9 = arith.constant 0 : i32
    %14 = arith.cmpi ne, %13, %c0_i32_9 : i32
    scf.if %14 {
      %c0_10 = arith.constant 0 : index
      %c0_11 = arith.constant 0 : index
      %15 = vector.load %arg5[%c0_10, %c0_11] : memref<8x128xf32, #tpu.memory_space<vmem>>, vector<8x128xf32>
      %c0_12 = arith.constant 0 : index
      %c0_13 = arith.constant 0 : index
      %c0_14 = arith.constant 0 : index
      %16 = vector.load %arg4[%c0_12, %c0_13, %c0_14] : memref<1x8x128xf32, #tpu.memory_space<vmem>>, vector<1x8x128xf32>
      %17 = vector.shape_cast %16 : vector<1x8x128xf32> to vector<8x128xf32>
      %18 = vector.shape_cast %15 : vector<8x128xf32> to vector<1x8x128xf32>
      tpu.vector_store %arg4[%c0_12, %c0_13, %c0_14], %18 {strides = array<i32>} : memref<1x8x128xf32, #tpu.memory_space<vmem>>, vector<1x8x128xf32>,
    } else {
    }
    return
  }
  func.func @transform_0(%arg0: i32, %arg1: i32) -> (i32, i32) {
    %c1_i32 = arith.constant 1 : i32
    %0 = arith.muli %arg0, %c1_i32 : i32
    %1 = arith.addi %0, %arg1 : i32
    %c0_i32 = arith.constant 0 : i32
    %2 = arith.minsi %1, %c0_i32 : i32
    %c0_i32_0 = arith.constant 0 : i32
    %c0_i32_1 = arith.constant 0 : i32
    return %2, %c0_i32_0 : i32, i32
  }
  func.func @transform_1(%arg0: i32, %arg1: i32) -> (i32, i32) {
    %c1_i32 = arith.constant 1 : i32
    %0 = arith.muli %arg0, %c1_i32 : i32
    %1 = arith.addi %0, %arg1 : i32
    %c0_i32 = arith.constant 0 : i32
    %2 = arith.minsi %1, %c0_i32 : i32
    %c0_i32_0 = arith.constant 0 : i32
    %c0_i32_1 = arith.constant 0 : i32
    return %2, %c0_i32_0 : i32, i32
  }
  func.func @transform_2(%arg0: i32, %arg1: i32) -> (i32, i32, i32) {
    %c0_i32 = arith.constant 0 : i32
    %c0_i32_0 = arith.constant 0 : i32
    %c0_i32_1 = arith.constant 0 : i32
    return %arg0, %c0_i32, %c0_i32_0 : i32, i32, i32
  }
}

</mosaic_0001>

<bundles_post_ra>
// kernel: tpu_custom_call.1
= control target key start
LH: loop header
LB: loop body
LE: loop exit
PB: predicated region body
PF: predicated region fallthrough
CT: control target
= control target key end

     0   :  { %7 = vsyncpa [#allocation4], 0  ;;  %s265_s0 = inlined_call_operand.hbm [shape: f32[64,128], index: 0, kind: input, shape index: {}]   ;;  %s266_s1 = inlined_call_operand.hbm [shape: f32[64,128], index: 1, kind: input, shape index: {}]   ;;  %s267_s2 = inlined_call_operand.hbm [shape: f32[1,8,128], index: 2, kind: output, shape index: {}]  }
   0x1   :  { %8 = vsyncpa [#allocation7], 0 }
   0x2   :  { %9 = vsyncpa [#allocation5], 0  ;;  %s209_s9 = smov [#allocation3]   ;;  %s137_s13 = scalar_lea.hbm %s265_s0, 1024 }
   0x3   :  { %s21_s10 = sshll.u32 %s209_s9, 4  ;;  %p138_p0 = scmp.ne.s32.totalorder %s265_s0, %s137_s13  ;;  %s22_s10 = int_to_ptr.vmem [resolvable:$true] %s21_s10 }
   0x4   :  { %p141_p1 = scmp.lt.u32.totalorder %s137_s13, %s265_s0 }
   0x6   :  { %p143_p2 = pnand %p141_p1, %p138_p0 }
   0x8   :  { %146 = shalt.err (!%p143_p2)
}
   0x9   :  { %s147_s18 = scalar_lea.vmem %s22_s10, 1024  ;;  %p152_p4 = scmp.lt.s32.totalorder %s22_s10, %s22_s10 }
   0xa   :  { %p148_p3 = scmp.ne.s32.totalorder %s22_s10, %s147_s18  ;;  %p153_p5 = scmp.lt.s32.totalorder %s147_s18, %s147_s18 }
   0xc   :  { %p154_p6 = por %p153_p5, %p152_p4 }
   0xe   :  { %p155_p7 = pnand %p154_p6, %p148_p3 }
  0x10   :  { %158 = shalt.err (!%p155_p7)
}
  0x11   :  { %s210_s19 = smov 128   ;;  %s211_s20 = smov 8  }
  0x12   :  { %27 = dma.hbm_to_vmem [thread:$0]  %s265_s0, 1024, %s22_s10, [#allocation4], %s210_s19, %s210_s19, %s211_s20  }
  0x13   :  { %s212_s23 = smov [#allocation6]   ;;  %s159_s27 = scalar_lea.hbm %s266_s1, 1024 }
  0x14   :  { %s39_s24 = sshll.u32 %s212_s23, 4  ;;  %p160_p8 = scmp.ne.s32.totalorder %s266_s1, %s159_s27  ;;  %s40_s24 = int_to_ptr.vmem [resolvable:$true] %s39_s24 }
  0x15   :  { %p163_p9 = scmp.lt.u32.totalorder %s159_s27, %s266_s1 }
  0x17   :  { %p165_p10 = pnand %p163_p9, %p160_p8 }
  0x19   :  { %168 = shalt.err (!%p165_p10)
}
  0x1a   :  { %s169_s4 = scalar_lea.vmem %s40_s24, 1024  ;;  %p174_p12 = scmp.lt.s32.totalorder %s40_s24, %s40_s24 }
  0x1b   :  { %p170_p11 = scmp.ne.s32.totalorder %s40_s24, %s169_s4  ;;  %p175_p13 = scmp.lt.s32.totalorder %s169_s4, %s169_s4 }
  0x1d   :  { %p176_p0 = por %p175_p13, %p174_p12 }
  0x1f   :  { %p177_p1 = pnand %p176_p0, %p170_p11 }
  0x21   :  { %180 = shalt.err (!%p177_p1)
}
  0x22   :  { %45 = dma.hbm_to_vmem [thread:$0]  %s266_s1, 1024, %s40_s24, [#allocation7], %s210_s19, %s210_s19, %s211_s20  }
  0x23   :  { %203 = dma.done.wait [#allocation4], 1024  }
  0x24   :  { %204 = vsyncadd [#allocation4], 4294966272 }
  0x25   :  { %205 = dma.done.wait [#allocation7], 1024  }
  0x26   :  { %206 = vsyncadd [#allocation7], 4294966272  ;;  %v65_v0 = vld [vmem:[#allocation3] sm:$0xff]  ;;  %v66_v1 = vld [vmem:[#allocation3 + $0x8] sm:$0xff]  ;;  %s213_s1 = smov [#allocation8]  }
  0x27   :  { %v67_v2 = vld [vmem:[#allocation3 + $0x10] sm:$0xff]  ;;  %v68_v3 = vld [vmem:[#allocation3 + $0x18] sm:$0xff]  ;;  %v69_v4 = vld [vmem:[#allocation3 + $0x20] sm:$0xff]  ;;  %s118_s6 = sshll.u32 %s213_s1, 4  ;;  %s119_s6 = int_to_ptr.vmem [resolvable:$true] %s118_s6 }
  0x28   :  { %v73_v5 = vld [vmem:[#allocation6] sm:$0xff]  ;;  %v74_v6 = vld [vmem:[#allocation6 + $0x8] sm:$0xff]  ;;  %v75_v7 = vld [vmem:[#allocation6 + $0x10] sm:$0xff]  ;;  %s181_s7 = scalar_lea.vmem %s119_s6, 128  ;;  %p186_p3 = scmp.lt.s32.totalorder %s119_s6, %s119_s6 }
  0x29   :  { %v76_v8 = vld [vmem:[#allocation6 + $0x18] sm:$0xff]  ;;  %v81_v9 = vsub.f32 %v65_v0, %v73_v5  ;;  %v77_v10 = vld [vmem:[#allocation6 + $0x20] sm:$0xff]  ;;  %v82_v11 = vsub.f32 %v66_v1, %v74_v6  ;;  %v83_v12 = vsub.f32 %v67_v2, %v75_v7  ;;  %v70_v14 = vld [vmem:[#allocation3 + $0x28] sm:$0xff]  ;;  %p182_p2 = scmp.ne.s32.totalorder %s119_s6, %s181_s7  ;;  %p187_p4 = scmp.lt.s32.totalorder %s181_s7, %s181_s7 }
  0x2a   :  { %v84_v13 = vsub.f32 %v68_v3, %v76_v8  ;;  %v78_v15 = vld [vmem:[#allocation6 + $0x28] sm:$0xff]  ;;  %v85_v17 = vsub.f32 %v69_v4, %v77_v10  ;;  %v71_v20 = vld [vmem:[#allocation3 + $0x30] sm:$0xff]  ;;  %v72_v25 = vld [vmem:[#allocation3 + $0x38] sm:$0xff] }
  0x2b   :  { %v89_v16 = vmul.f32 %v81_v9, %v81_v9  ;;  %v90_v18 = vmul.f32 %v82_v11, %v82_v11  ;;  %v91_v19 = vmul.f32 %v83_v12, %v83_v12  ;;  %v79_v21 = vld [vmem:[#allocation6 + $0x30] sm:$0xff]  ;;  %v86_v22 = vsub.f32 %v70_v14, %v78_v15  ;;  %v80_v26 = vld [vmem:[#allocation6 + $0x38] sm:$0xff]  ;;  %p188_p5 = por %p187_p4, %p186_p3 }
  0x2c   :  { %v92_v23 = vmul.f32 %v84_v13, %v84_v13  ;;  %v87_v27 = vsub.f32 %v71_v20, %v79_v21  ;;  %v93_v28 = vmul.f32 %v85_v17, %v85_v17  ;;  %v88_v30 = vsub.f32 %v72_v25, %v80_v26 }
  0x2d   :  { %v98_v24 = vadd.f32 %v90_v18, %v89_v16  ;;  %v94_v31 = vmul.f32 %v86_v22, %v86_v22  ;;  %p189_p6 = pnand %p188_p5, %p182_p2 }
  0x2e   :  { %v95_v33 = vmul.f32 %v87_v27, %v87_v27  ;;  %v96_v35 = vmul.f32 %v88_v30, %v88_v30 }
  0x2f   :  { %v99_v29 = vadd.f32 %v98_v24, %v91_v19 }
  0x31   :  { %v100_v32 = vadd.f32 %v99_v29, %v92_v23 }
  0x33   :  { %v101_v34 = vadd.f32 %v100_v32, %v93_v28 }
  0x35   :  { %v102_v36 = vadd.f32 %v101_v34, %v94_v31 }
  0x37   :  { %v103_v37 = vadd.f32 %v102_v36, %v95_v33 }
  0x39   :  { %v104_v38 = vadd.f32 %v103_v37, %v96_v35 }
  0x3b   :  { %111 = vst [vmem:[#allocation8] sm:$0xff] %v104_v38 }
  0x3c   :  { %192 = shalt.err (!%p189_p6)
}
  0x3d   :  { %s193_s10 = scalar_lea.hbm %s267_s2, 128 }
  0x3e   :  { %p194_p7 = scmp.ne.s32.totalorder %s267_s2, %s193_s10  ;;  %p197_p8 = scmp.lt.u32.totalorder %s193_s10, %s267_s2 }
  0x40   :  { %p199_p9 = pnand %p197_p8, %p194_p7 }
  0x42   :  { %202 = shalt.err (!%p199_p9)
}
  0x43   :  { %121 = dma.vmem_to_hbm [thread:$0]  %s119_s6, 128, %s267_s2, [#allocation5]  }
  0x44   :  { %207 = dma.done.wait [#allocation5], 128  }
  0x45   :  { %208 = vsyncadd [#allocation5], 4294967168 }
  0x46   :  { %125 = vsyncpa [#allocation4], 1 }
  0x47   :  { %126 = vsyncpa [#allocation7], 1 }
  0x48   :  { %127 = vsyncpa [#allocation5], 1 }

</bundles_post_ra>
